<compile_context>
chip_gen: v6e
topology: v6e:2x2x1
jax: 0.10.0
libtpu: 0.0.40
codegen_flags: <defaults>
</compile_context>

<pallas_src>
import jax
import jax.numpy as jnp
from jax.experimental import pallas as pl
from jax.experimental.pallas import tpu as pltpu

# ---- module hyper-parameters (synthetic, deterministic) --------------------
N_IN = 32           # nin
N_OUT = 32          # nout
N_HEADS = 4         # nHeads
D_HEAD = N_OUT // N_HEADS
CTX_LEN = 8         # contextLength
SEQ = 8             # nTokens (== contextLength here)
BATCH = 2
BT = BATCH * SEQ    # flattened rows

# packed-parameter slab row offsets (all multiples of 8 -> sublane-aligned)
_WQKV_OFF = 0                       # (3*N_OUT, N_IN)   = (96, 32)
_WOUT_OFF = _WQKV_OFF + 3 * N_OUT   # (N_OUT, N_OUT)    = (32, 32)  rows = ffw.T
_MASK_OFF = _WOUT_OFF + N_OUT       # (N_HEADS*BT, 32)  = (64, 32)  cols 0:BT valid
_BIAS_OFF = _MASK_OFF + N_HEADS * BT  # (8, 32)          row 0 = ffb
_SLAB_ROWS = _BIAS_OFF + 8          # 200


def _mha_kernel(x_ref, params_ref, o_ref):
    """Whole flattened (B*T, N_IN) problem in one invocation.

    x_ref      : (BT, N_IN)        flattened input tokens
    params_ref : (_SLAB_ROWS, 32)  packed constants (see offsets above)
    o_ref      : (BT, N_OUT)       output
    """
    x = x_ref[...]                                              # (16, 32)
    bt = x.shape[0]

    # Fused QKV projection for every row and head (A @ B^T, MXU friendly):
    #   qkv_t[f, r] = sum_n Wqkv[f, n] * x[r, n]   -> (96, 16)
    # Row layout is head-major: [h: q(8) k(8) v(8)], 1/sqrt(d) folded into q.
    wqkv = params_ref[_WQKV_OFF:_WQKV_OFF + 3 * N_OUT, :]       # (96, 32)
    qkv_t = jax.lax.dot_general(
        wqkv, x,
        dimension_numbers=(((1,), (1,)), ((), ())),
        preferred_element_type=jnp.float32)                     # (96, 16)

    # ---- stacked scores for all heads: (N_HEADS*BT, BT) = (64, 16) --------
    scores = []
    for h in range(N_HEADS):                                    # static unroll
        base = 3 * D_HEAD * h                                   # 0,24,48,72 (mult of 8)
        q = qkv_t[base:base + D_HEAD, :]                        # (8, 16), pre-scaled
        k = qkv_t[base + D_HEAD:base + 2 * D_HEAD, :]           # (8, 16)
        # q^T @ k without materializing a transpose: contract dim 0 of both.
        s_h = jax.lax.dot_general(
            q, k, dimension_numbers=(((0,), (0,)), ((), ())),
            preferred_element_type=jnp.float32)                 # (16, 16)
        scores.append(s_h)
    s_all = jnp.concatenate(scores, axis=0)                     # (64, 16)

    # One masked softmax for all heads (mask precomputed + head-tiled on host).
    mask_all = params_ref[_MASK_OFF:_MASK_OFF + N_HEADS * bt, :]   # (64, 32)
    s_all = s_all + mask_all[:, :bt]                               # (64, 16)
    s_max = jnp.max(s_all, axis=-1, keepdims=True)
    e = jnp.exp(s_all - s_max)
    denom = jnp.sum(e, axis=-1, keepdims=True)
    p_all = e / denom                                              # (64, 16)

    # ---- context + fused head-concat/output-projection ---------------------
    # acc starts as the broadcast bias; per-head ctx @ Wout[h] accumulates in.
    bias = params_ref[_BIAS_OFF:_BIAS_OFF + 1, :]               # (1, 32)
    acc = jnp.broadcast_to(bias, (bt, N_OUT)).astype(jnp.float32)
    for h in range(N_HEADS):                                    # static unroll
        base = 3 * D_HEAD * h
        v = qkv_t[base + 2 * D_HEAD:base + 3 * D_HEAD, :]       # (8, 16)
        p_h = p_all[h * bt:(h + 1) * bt, :]                     # (16, 16) aligned slice
        # ctx (BT, d) = p @ v^T  (contract last dim of both)
        ctx = jax.lax.dot_general(
            p_h, v, dimension_numbers=(((1,), (1,)), ((), ())),
            preferred_element_type=jnp.float32)                 # (16, 8)
        w_h = params_ref[_WOUT_OFF + h * D_HEAD:
                         _WOUT_OFF + (h + 1) * D_HEAD, :]       # (8, 32)
        acc = acc + jnp.dot(ctx, w_h, preferred_element_type=jnp.float32)

    o_ref[...] = acc.astype(o_ref.dtype)


def prepare_params(wqkv, ffw, ffb):
    """Host-side, one-time prep: pack all constants into one (200, 32) slab.

    wqkv : (3*N_OUT, N_IN)  = Wqkv.weight (torch layout)
    ffw  : (N_OUT, N_OUT)   = ff.weight
    ffb  : (N_OUT,)         = ff.bias
    """
    scale = 1.0 / (D_HEAD ** 0.5)
    w = wqkv.reshape(3, N_HEADS, D_HEAD, N_IN)
    w = w.at[0].multiply(scale)                                  # fold 1/sqrt(d) into Q
    wqkv_heads = jnp.transpose(w, (1, 0, 2, 3)).reshape(3 * N_OUT, N_IN)   # (96, 32)

    wout_flat = ffw.T.astype(jnp.float32)                        # (32, 32), head-major rows

    # Static block-diagonal causal mask over the flattened (batch*token) axis,
    # tiled per head so the kernel adds it once to the stacked scores.
    idx = jnp.arange(BT)
    same_batch = (idx[:, None] // SEQ) == (idx[None, :] // SEQ)
    causal = (idx[None, :] % SEQ) <= (idx[:, None] % SEQ)
    mask_bias = jnp.where(same_batch & causal, 0.0, -1e30).astype(jnp.float32)  # (16, 16)
    mask_tiled = jnp.tile(mask_bias, (N_HEADS, 1))               # (64, 16)
    mask_padded = jnp.pad(mask_tiled, ((0, 0), (0, N_IN - BT)))  # (64, 32)

    bias_padded = jnp.zeros((8, N_OUT), jnp.float32).at[0].set(ffb)  # (8, 32)

    slab = jnp.concatenate(
        [wqkv_heads.astype(jnp.float32), wout_flat, mask_padded, bias_padded],
        axis=0)                                                  # (200, 32)
    assert slab.shape == (_SLAB_ROWS, N_IN)
    return slab


def multi_head_attention(y, params_slab):
    """y: (B, T, N_IN) float32. Returns (B, T, N_OUT) float32."""
    B, T, _ = y.shape
    x_flat = y.reshape(B * T, N_IN)                              # free, row-major

    out_flat = pl.pallas_call(
        _mha_kernel,
        out_shape=jax.ShapeDtypeStruct((B * T, N_OUT), jnp.float32),
        in_specs=[
            pl.BlockSpec(memory_space=pltpu.MemorySpace.VMEM),   # x
            pl.BlockSpec(memory_space=pltpu.MemorySpace.VMEM),   # packed params
        ],
        out_specs=pl.BlockSpec(memory_space=pltpu.MemorySpace.VMEM),
    )(x_flat, params_slab)

    return out_flat.reshape(B, T, N_OUT)


def _reference(y, wqkv, ffw, ffb):
    """Pure-JAX mirror of the PyTorch forward (original weight layout)."""
    B, T, _ = y.shape
    qkv = jnp.einsum("btn,fn->btf", y, wqkv)                     # Linear(nin, 3*nout, bias=False)
    qkv = qkv.reshape(B, T, 3, N_HEADS, D_HEAD)
    qkv = jnp.transpose(qkv, (2, 0, 3, 1, 4))                    # (3, B, H, T, d)
    q, k, v = qkv[0], qkv[1], qkv[2]
    att = jnp.einsum("bhtd,bhsd->bhts", q, k)
    mask = jnp.triu(jnp.ones((T, T), jnp.bool_), k=1)
    att = jnp.where(mask, -jnp.inf, att)
    att = jax.nn.softmax(att / (D_HEAD ** 0.5), axis=-1)
    ctx = jnp.einsum("bhts,bhsd->bhtd", att, v)
    ctx = jnp.transpose(ctx, (0, 2, 1, 3)).reshape(B, T, N_OUT)
    return jnp.einsum("bto,po->btp", ctx, ffw) + ffb             # Linear(nout, nout)


if __name__ == "__main__":
    key = jax.random.PRNGKey(0)
    k_y, k_wqkv, k_ffw, k_ffb = jax.random.split(key, 4)

    # Deterministic synthetic parameters (torch layout from the module __init__):
    #   Wqkv: Linear(nin, 3*nout, bias=False) -> weight (3*nout, nin)
    #   ff:   Linear(nout, nout)              -> weight (nout, nout) + bias (nout,)
    wqkv = jax.random.normal(k_wqkv, (3 * N_OUT, N_IN), jnp.float32) * 0.05
    ffw = jax.random.normal(k_ffw, (N_OUT, N_OUT), jnp.float32) * 0.05
    ffb = jax.random.normal(k_ffb, (N_OUT,), jnp.float32) * 0.05
    y = jax.random.normal(k_y, (BATCH, SEQ, N_IN), jnp.float32)

    params_slab = prepare_params(wqkv, ffw, ffb)                 # one-time host prep
    out = multi_head_attention(y, params_slab)
    out = jax.block_until_ready(out)

    ref = _reference(y, wqkv, ffw, ffb)
    assert out.shape == (BATCH, SEQ, N_OUT)
    assert jnp.allclose(out, ref, atol=1e-4, rtol=1e-4), float(jnp.max(jnp.abs(out - ref)))

    print("KERNEL_OK")
</pallas_src>

<mosaic_0001>
module attributes {stable_mosaic.version = 11 : i64} {
  func.func @_mha_kernel(%arg0: memref<16x32xf32, #tpu.memory_space<vmem>>, %arg1: memref<200x32xf32, #tpu.memory_space<vmem>>, %arg2: memref<16x32xf32, #tpu.memory_space<vmem>>) attributes {dimension_semantics = [], scalar_prefetch = 0 : i64, scratch_operands = 0 : i64, tpu.core_type = #tpu.core_type<tc>} {
    %c0 = arith.constant 0 : index
    %c0_0 = arith.constant 0 : index
    %0 = vector.load %arg0[%c0, %c0_0] : memref<16x32xf32, #tpu.memory_space<vmem>>, vector<16x32xf32>
    %c0_1 = arith.constant 0 : index
    %c0_2 = arith.constant 0 : index
    %1 = vector.load %arg1[%c0_1, %c0_2] : memref<200x32xf32, #tpu.memory_space<vmem>>, vector<96x32xf32>
    %cst = arith.constant dense<0.000000e+00> : vector<96x16xf32>
    %2 = tpu.matmul %1, %0, %cst {dimension_numbers = #tpu.dot_dimension_numbers<[1], [1], [0], [0], [0, 0, 1, 0], [], []>} : vector<96x32xf32>, vector<16x32xf32>, vector<96x16xf32> -> vector<96x16xf32>
    %3 = vector.extract_strided_slice %2 {offsets = [0, 0], sizes = [8, 16], strides = [1, 1]} : vector<96x16xf32> to vector<8x16xf32>
    %4 = vector.extract_strided_slice %2 {offsets = [8, 0], sizes = [8, 16], strides = [1, 1]} : vector<96x16xf32> to vector<8x16xf32>
    %cst_3 = arith.constant dense<0.000000e+00> : vector<16x16xf32>
    %5 = tpu.matmul %3, %4, %cst_3 {dimension_numbers = #tpu.dot_dimension_numbers<[0], [0], [1], [1], [0, 1, 1, 1], [], []>} : vector<8x16xf32>, vector<8x16xf32>, vector<16x16xf32> -> vector<16x16xf32>
    %6 = vector.extract_strided_slice %2 {offsets = [24, 0], sizes = [8, 16], strides = [1, 1]} : vector<96x16xf32> to vector<8x16xf32>
    %7 = vector.extract_strided_slice %2 {offsets = [32, 0], sizes = [8, 16], strides = [1, 1]} : vector<96x16xf32> to vector<8x16xf32>
    %cst_4 = arith.constant dense<0.000000e+00> : vector<16x16xf32>
    %8 = tpu.matmul %6, %7, %cst_4 {dimension_numbers = #tpu.dot_dimension_numbers<[0], [0], [1], [1], [0, 1, 1, 1], [], []>} : vector<8x16xf32>, vector<8x16xf32>, vector<16x16xf32> -> vector<16x16xf32>
    %9 = vector.extract_strided_slice %2 {offsets = [48, 0], sizes = [8, 16], strides = [1, 1]} : vector<96x16xf32> to vector<8x16xf32>
    %10 = vector.extract_strided_slice %2 {offsets = [56, 0], sizes = [8, 16], strides = [1, 1]} : vector<96x16xf32> to vector<8x16xf32>
    %cst_5 = arith.constant dense<0.000000e+00> : vector<16x16xf32>
    %11 = tpu.matmul %9, %10, %cst_5 {dimension_numbers = #tpu.dot_dimension_numbers<[0], [0], [1], [1], [0, 1, 1, 1], [], []>} : vector<8x16xf32>, vector<8x16xf32>, vector<16x16xf32> -> vector<16x16xf32>
    %12 = vector.extract_strided_slice %2 {offsets = [72, 0], sizes = [8, 16], strides = [1, 1]} : vector<96x16xf32> to vector<8x16xf32>
    %13 = vector.extract_strided_slice %2 {offsets = [80, 0], sizes = [8, 16], strides = [1, 1]} : vector<96x16xf32> to vector<8x16xf32>
    %cst_6 = arith.constant dense<0.000000e+00> : vector<16x16xf32>
    %14 = tpu.matmul %12, %13, %cst_6 {dimension_numbers = #tpu.dot_dimension_numbers<[0], [0], [1], [1], [0, 1, 1, 1], [], []>} : vector<8x16xf32>, vector<8x16xf32>, vector<16x16xf32> -> vector<16x16xf32>
    %15 = tpu.concatenate %5, %8, %11, %14 in 0 : vector<16x16xf32>, vector<16x16xf32>, vector<16x16xf32>, vector<16x16xf32> -> vector<64x16xf32>
    %c128 = arith.constant 128 : index
    %c0_7 = arith.constant 0 : index
    %16 = vector.load %arg1[%c128, %c0_7] : memref<200x32xf32, #tpu.memory_space<vmem>>, vector<64x32xf32>
    %17 = vector.extract_strided_slice %16 {offsets = [0, 0], sizes = [64, 16], strides = [1, 1]} : vector<64x32xf32> to vector<64x16xf32>
    %18 = arith.addf %15, %17 : vector<64x16xf32>
    %cst_8 = arith.constant dense<0xFF800000> : vector<64xf32>
    %19 = vector.multi_reduction <maximumf>, %18, %cst_8 [1] : vector<64x16xf32> to vector<64xf32>
    %20 = vector.shape_cast %19 : vector<64xf32> to vector<64x1xf32>
    %21 = vector.broadcast %20 : vector<64x1xf32> to vector<64x16xf32>
    %22 = arith.subf %18, %21 : vector<64x16xf32>
    %23 = math.exp %22 : vector<64x16xf32>
    %cst_9 = arith.constant dense<0.000000e+00> : vector<64xf32>
    %24 = vector.multi_reduction <add>, %23, %cst_9 [1] : vector<64x16xf32> to vector<64xf32>
    %25 = vector.shape_cast %24 : vector<64xf32> to vector<64x1xf32>
    %26 = vector.broadcast %25 : vector<64x1xf32> to vector<64x16xf32>
    %27 = arith.divf %23, %26 : vector<64x16xf32>
    %c192 = arith.constant 192 : index
    %c0_10 = arith.constant 0 : index
    %28 = vector.load %arg1[%c192, %c0_10] : memref<200x32xf32, #tpu.memory_space<vmem>>, vector<1x32xf32>
    %29 = vector.shape_cast %28 : vector<1x32xf32> to vector<1x32xf32>
    %30 = vector.broadcast %29 : vector<1x32xf32> to vector<16x32xf32>
    %31 = vector.extract_strided_slice %2 {offsets = [16, 0], sizes = [8, 16], strides = [1, 1]} : vector<96x16xf32> to vector<8x16xf32>
    %32 = vector.extract_strided_slice %27 {offsets = [0, 0], sizes = [16, 16], strides = [1, 1]} : vector<64x16xf32> to vector<16x16xf32>
    %cst_11 = arith.constant dense<0.000000e+00> : vector<16x8xf32>
    %33 = tpu.matmul %32, %31, %cst_11 {dimension_numbers = #tpu.dot_dimension_numbers<[1], [1], [0], [0], [0, 0, 1, 0], [], []>} : vector<16x16xf32>, vector<8x16xf32>, vector<16x8xf32> -> vector<16x8xf32>
    %c96 = arith.constant 96 : index
    %c0_12 = arith.constant 0 : index
    %34 = vector.load %arg1[%c96, %c0_12] : memref<200x32xf32, #tpu.memory_space<vmem>>, vector<8x32xf32>
    %cst_13 = arith.constant dense<0.000000e+00> : vector<16x32xf32>
    %35 = tpu.matmul %33, %34, %cst_13 {dimension_numbers = #tpu.dot_dimension_numbers<[1], [0], [0], [1], [0, 0, 1, 1], [], []>} : vector<16x8xf32>, vector<8x32xf32>, vector<16x32xf32> -> vector<16x32xf32>
    %36 = arith.addf %30, %35 : vector<16x32xf32>
    %37 = vector.extract_strided_slice %2 {offsets = [40, 0], sizes = [8, 16], strides = [1, 1]} : vector<96x16xf32> to vector<8x16xf32>
    %38 = vector.extract_strided_slice %27 {offsets = [16, 0], sizes = [16, 16], strides = [1, 1]} : vector<64x16xf32> to vector<16x16xf32>
    %cst_14 = arith.constant dense<0.000000e+00> : vector<16x8xf32>
    %39 = tpu.matmul %38, %37, %cst_14 {dimension_numbers = #tpu.dot_dimension_numbers<[1], [1], [0], [0], [0, 0, 1, 0], [], []>} : vector<16x16xf32>, vector<8x16xf32>, vector<16x8xf32> -> vector<16x8xf32>
    %c104 = arith.constant 104 : index
    %c0_15 = arith.constant 0 : index
    %40 = vector.load %arg1[%c104, %c0_15] : memref<200x32xf32, #tpu.memory_space<vmem>>, vector<8x32xf32>
    %cst_16 = arith.constant dense<0.000000e+00> : vector<16x32xf32>
    %41 = tpu.matmul %39, %40, %cst_16 {dimension_numbers = #tpu.dot_dimension_numbers<[1], [0], [0], [1], [0, 0, 1, 1], [], []>} : vector<16x8xf32>, vector<8x32xf32>, vector<16x32xf32> -> vector<16x32xf32>
    %42 = arith.addf %36, %41 : vector<16x32xf32>
    %43 = vector.extract_strided_slice %2 {offsets = [64, 0], sizes = [8, 16], strides = [1, 1]} : vector<96x16xf32> to vector<8x16xf32>
    %44 = vector.extract_strided_slice %27 {offsets = [32, 0], sizes = [16, 16], strides = [1, 1]} : vector<64x16xf32> to vector<16x16xf32>
    %cst_17 = arith.constant dense<0.000000e+00> : vector<16x8xf32>
    %45 = tpu.matmul %44, %43, %cst_17 {dimension_numbers = #tpu.dot_dimension_numbers<[1], [1], [0], [0], [0, 0, 1, 0], [], []>} : vector<16x16xf32>, vector<8x16xf32>, vector<16x8xf32> -> vector<16x8xf32>
    %c112 = arith.constant 112 : index
    %c0_18 = arith.constant 0 : index
    %46 = vector.load %arg1[%c112, %c0_18] : memref<200x32xf32, #tpu.memory_space<vmem>>, vector<8x32xf32>
    %cst_19 = arith.constant dense<0.000000e+00> : vector<16x32xf32>
    %47 = tpu.matmul %45, %46, %cst_19 {dimension_numbers = #tpu.dot_dimension_numbers<[1], [0], [0], [1], [0, 0, 1, 1], [], []>} : vector<16x8xf32>, vector<8x32xf32>, vector<16x32xf32> -> vector<16x32xf32>
    %48 = arith.addf %42, %47 : vector<16x32xf32>
    %49 = vector.extract_strided_slice %2 {offsets = [88, 0], sizes = [8, 16], strides = [1, 1]} : vector<96x16xf32> to vector<8x16xf32>
    %50 = vector.extract_strided_slice %27 {offsets = [48, 0], sizes = [16, 16], strides = [1, 1]} : vector<64x16xf32> to vector<16x16xf32>
    %cst_20 = arith.constant dense<0.000000e+00> : vector<16x8xf32>
    %51 = tpu.matmul %50, %49, %cst_20 {dimension_numbers = #tpu.dot_dimension_numbers<[1], [1], [0], [0], [0, 0, 1, 0], [], []>} : vector<16x16xf32>, vector<8x16xf32>, vector<16x8xf32> -> vector<16x8xf32>
    %c120 = arith.constant 120 : index
    %c0_21 = arith.constant 0 : index
    %52 = vector.load %arg1[%c120, %c0_21] : memref<200x32xf32, #tpu.memory_space<vmem>>, vector<8x32xf32>
    %cst_22 = arith.constant dense<0.000000e+00> : vector<16x32xf32>
    %53 = tpu.matmul %51, %52, %cst_22 {dimension_numbers = #tpu.dot_dimension_numbers<[1], [0], [0], [1], [0, 0, 1, 1], [], []>} : vector<16x8xf32>, vector<8x32xf32>, vector<16x32xf32> -> vector<16x32xf32>
    %54 = arith.addf %48, %53 : vector<16x32xf32>
    %c0_23 = arith.constant 0 : index
    %c0_24 = arith.constant 0 : index
    %55 = vector.load %arg2[%c0_23, %c0_24] : memref<16x32xf32, #tpu.memory_space<vmem>>, vector<16x32xf32>
    tpu.vector_store %arg2[%c0_23, %c0_24], %54 {strides = array<i32>} : memref<16x32xf32, #tpu.memory_space<vmem>>, vector<16x32xf32>,
    return
  }
}

</mosaic_0001>

<bundles_post_ra>
// kernel: tpu_custom_call.1
= control target key start
LH: loop header
LB: loop body
LE: loop exit
PB: predicated region body
PF: predicated region fallthrough
CT: control target
= control target key end

     0   :  { %vm26_vm0 = vcmask 261120   ;;  %s1860_s0 = inlined_call_operand.vmem [shape: f32[16,32], index: 0, kind: input, shape index: {}]   ;;  %s1861_s1 = inlined_call_operand.vmem [shape: f32[200,32], index: 1, kind: input, shape index: {}]   ;;  %s1862_s2 = inlined_call_operand.hbm [shape: f32[16,32], index: 2, kind: output, shape index: {}]  }
   0x1   :  { %v13_v0 = vld [vmem:[%s1860_s0 + $0x8] sm:$0xff]  ;;  %v12_v1 = vld [vmem:[%s1860_s0] sm:$0xff] }
   0x2   :  { %v14_v2 = vld [vmem:[%s1861_s1] sm:$0xff]  ;;  %1540 = vmatprep.subr.msk.mxu0 %vm26_vm0, %v13_v0 }
   0x3   :  { %1544 = vmatprep.mubr.msk.f32.mxu0 %vm26_vm0, %v14_v2  ;;  %1541 = vmatpush3.xpose.msk.msra.mxu0 %vm26_vm0, %v13_v0 }
   0x4   :  { %1542 = vmatprep.subr.msk.mxu0 %vm26_vm0, %v12_v1 }
   0x5   :  { %7 = vsyncpa [#allocation3], 0  ;;  %v15_v3 = vld [vmem:[%s1861_s1 + $0x8] sm:$0xff]  ;;  %v16_v4 = vld [vmem:[%s1861_s1 + $0x10] sm:$0xff]  ;;  %vm663_vm1 = vcmask 130048   ;;  %vm226_vm2 = vcmask 64512  }
   0x6   :  { %v17_v5 = vld [vmem:[%s1861_s1 + $0x18] sm:$0xff]  ;;  %v18_v6 = vld [vmem:[%s1861_s1 + $0x20] sm:$0xff]  ;;  %v19_v7 = vld [vmem:[%s1861_s1 + $0x28] sm:$0xff]  ;;  %s1680_s5 = smov [#allocation2]  }
   0x7   :  { %1543 = vmatpush3.xpose.msk.msra.mxu0 %vm26_vm0, %v12_v1  ;;  %v20_v8 = vld [vmem:[%s1861_s1 + $0x30] sm:$0xff]  ;;  %v21_v9 = vld [vmem:[%s1861_s1 + $0x38] sm:$0xff]  ;;  %v22_v10 = vld [vmem:[%s1861_s1 + $0x40] sm:$0xff]  ;;  %s1436_s6 = sshll.u32 %s1680_s5, 4  ;;  %s1437_s6 = int_to_ptr.vmem [resolvable:$true] %s1436_s6 }
   0x8   :  { %v23_v11 = vld [vmem:[%s1861_s1 + $0x48] sm:$0xff]  ;;  %v24_v12 = vld [vmem:[%s1861_s1 + $0x50] sm:$0xff]  ;;  %v25_v13 = vld [vmem:[%s1861_s1 + $0x58] sm:$0xff]  ;;  %p1663_p1 = scmp.lt.s32.totalorder %s1437_s6, %s1437_s6 }
   0x9   :  { %v648_v34 = vld [vmem:[%s1861_s1 + $0x88] sm:$0xff]  ;;  %v647_v36 = vld [vmem:[%s1861_s1 + $0x80] sm:$0xff]  ;;  %v649_v43 = vld [vmem:[%s1861_s1 + $0x90] sm:$0xff] }
   0xa   :  { %1545 = vmatmul.mubr.msk.f32.vlgmr.msra.gmra.mxu0 %vm26_vm0, %v15_v3  ;;  %v651_v47 = vld [vmem:[%s1861_s1 + $0xa0] sm:$0xff]  ;;  %v653_v53 = vld [vmem:[%s1861_s1 + $0xb0] sm:$0xff] }
   0xb   :  { %1547 = vmatprep.mubr.msk.f32.mxu0 %vm26_vm0, %v16_v4 }
   0xe   :  { %1548 = vmatmul.mubr.msk.f32.gmra.mxu0 %vm26_vm0, %v17_v5 }
   0xf   :  { %1550 = vmatprep.mubr.msk.f32.mxu0 %vm26_vm0, %v18_v6  ;;  %v650_v6 = vld [vmem:[%s1861_s1 + $0x98] sm:$0xff] }
  0x12   :  { %1551 = vmatmul.mubr.msk.f32.gmra.mxu0 %vm26_vm0, %v19_v7 }
  0x13   :  { %1553 = vmatprep.mubr.msk.f32.mxu0 %vm26_vm0, %v20_v8 }
  0x16   :  { %1554 = vmatmul.mubr.msk.f32.gmra.mxu0 %vm26_vm0, %v21_v9 }
  0x17   :  { %1556 = vmatprep.mubr.msk.f32.mxu0 %vm26_vm0, %v22_v10 }
  0x1a   :  { %1557 = vmatmul.mubr.msk.f32.gmra.mxu0 %vm26_vm0, %v23_v11 }
  0x1b   :  { %1559 = vmatprep.mubr.msk.f32.mxu0 %vm26_vm0, %v24_v12  ;;  %v652_v12 = vld [vmem:[%s1861_s1 + $0xa8] sm:$0xff] }
  0x1e   :  { %1560 = vmatmul.mubr.msk.f32.gmra.mxu0 %vm26_vm0, %v25_v13 }
  0xca   :  { %v1546_v14 = vpop.f32.mrf.mxu0 }
  0xcb   :  { %1562 = vmatprep.subr.mxu1 %v1546_v14 }
  0xcc   :  { %v135_v15 = vpop.f32.mrf.mxu0  ;;  %1563 = vmatpush3.msra.mxu1 %v1546_v14 }
  0xcd   :  { %194 = vxpose.xlu0.b32.start.end [1/1] (short) (narrow) %v135_v15, 16 }
  0xce   :  { %v1549_v16 = vpop.f32.mrf.mxu0 }
  0xd0   :  { %v145_v17 = vpop.f32.mrf.mxu0 }
  0xd2   :  { %v1756_v18 = vpop.f32.mrf.mxu0  ;;  %308 = vxpose.xlu0.b32.start.end [1/1] (short) (narrow) %v1549_v16, 16 }
  0xd4   :  { %v155_v19 = vpop.f32.mrf.mxu0 }
  0xd5   :  { %1567 = vmatprep.subr.mxu1 %v155_v19 }
  0xd6   :  { %v1555_v20 = vpop.f32.mrf.mxu0 }
  0xd8   :  { %v165_v21 = vpop.f32.mrf.mxu0 }
  0xd9   :  { %421 = vxpose.xlu1.b32.start.end [1/1] (short) (narrow) %v165_v21, 16 }
  0xda   :  { %v1558_v22 = vpop.f32.mrf.mxu0 }
  0xdc   :  { %v175_v23 = vpop.f32.mrf.mxu0 }
  0xdd   :  { %1602 = vmatprep.subr.msk.mxu0 %vm663_vm1, %v175_v23 }
  0xde   :  { %534 = vxpose.xlu1.b32.start.end [1/1] (short) (narrow) %v1558_v22, 16  ;;  %v1759_v24 = vpop.f32.mrf.mxu0  ;;  %1603 = vmatpush3.xpose.msk.msra.mxu0 %vm663_vm1, %v175_v23 }
  0xdf   :  { %1612 = vmatprep.subr.msk.mxu0 %vm663_vm1, %v1759_v24 }
  0xe0   :  { %v185_v28 = vpop.f32.mrf.mxu0 }
 0x149   :  { %v210_v25 = vpop.trf.xlu0 }
 0x14a   :  { %1564 = vmatprep.mubr.msk.f32.mxu1 %vm226_vm2, %v210_v25 }
 0x14d   :  { %v211_v26 = vpop.trf.xlu0 }
 0x14e   :  { %1565 = vmatmul.mubr.msk.f32.vlgmr.msra.gmra.mxu1 %vm226_vm2, %v211_v26 }
 0x14f   :  { %1568 = vmatpush3.msra.mxu1 %v155_v19  ;;  %v654_v19 = vld [vmem:[%s1861_s1 + $0xb8] sm:$0xff] }
 0x150   :  { %1572 = vmatprep.subr.mxu1 %v1555_v20 }
 0x151   :  { %v324_v27 = vpop.trf.xlu0 }
 0x152   :  { %1569 = vmatprep.mubr.msk.f32.mxu1 %vm226_vm2, %v324_v27 }
 0x155   :  { %v325_v29 = vpop.trf.xlu0  ;;  %v437_v30 = vpop.trf.xlu1 }
 0x156   :  { %1570 = vmatmul.mubr.msk.f32.vlgmr.msra.gmra.mxu1 %vm226_vm2, %v325_v29  ;;  %v841_v29 = vld [vmem:[%s1861_s1 + $0x60] sm:$0xff] }
 0x157   :  { %1573 = vmatpush3.msra.mxu1 %v1555_v20  ;;  %1574 = vmatprep.mubr.msk.f32.mxu1 %vm226_vm2, %v437_v30 }
 0x158   :  { %1577 = vmatprep.subr.mxu1 %v185_v28 }
 0x159   :  { %v438_v31 = vpop.trf.xlu1 }
 0x15a   :  { %1575 = vmatmul.mubr.msk.f32.vlgmr.msra.gmra.mxu1 %vm226_vm2, %v438_v31 }
 0x15b   :  { %1578 = vmatpush3.msra.mxu1 %v185_v28 }
 0x15c   :  { %1582 = vmatprep.subr.msk.mxu1 %vm663_vm1, %v145_v17 }
 0x15d   :  { %v550_v32 = vpop.trf.xlu1 }
 0x15e   :  { %1579 = vmatprep.mubr.msk.f32.mxu1 %vm226_vm2, %v550_v32 }
 0x161   :  { %v551_v33 = vpop.trf.xlu1 }
 0x162   :  { %1580 = vmatmul.mubr.msk.f32.vlgmr.msra.gmra.mxu1 %vm226_vm2, %v551_v33 }
 0x163   :  { %1583 = vmatpush3.xpose.msk.msra.mxu1 %vm663_vm1, %v145_v17 }
 0x164   :  { %1587 = vmatprep.subr.mxu1 %v841_v29 }
 0x20e   :  { %v1566_v35 = vpop.f32.mrf.mxu1 }
 0x20f   :  { %v656_v37 = vadd.f32 %v1566_v35, %v648_v34 }
 0x210   :  { %v299_v38 = vpop.f32.mrf.mxu1 }
 0x211   :  { %v655_v39 = vadd.f32 %v647_v36, %v299_v38  ;;  %v667_v40 = vsel %vm663_vm1, %v656_v37, -inf }
 0x212   :  { %668 = vmax.xlane.f32.xlu1 %v667_v40 }
 0x213   :  { %v664_v41 = vsel %vm663_vm1, %v655_v39, -inf }
 0x214   :  { %665 = vmax.xlane.f32.xlu0 %v664_v41 }
 0x216   :  { %v1571_v42 = vpop.f32.mrf.mxu1 }
 0x217   :  { %v658_v10 = vadd.f32 %v1571_v42, %v650_v6  ;;  %v1009_v6 = vld [vmem:[%s1861_s1 + $0x68] sm:$0xff] }
 0x218   :  { %v412_v44 = vpop.f32.mrf.mxu1 }
 0x219   :  { %v657_v45 = vadd.f32 %v649_v43, %v412_v44  ;;  %v673_v16 = vsel %vm663_vm1, %v658_v10, -inf }
 0x21a   :  { %v1576_v46 = vpop.f32.mrf.mxu1 }
 0x21b   :  { %v670_v48 = vsel %vm663_vm1, %v657_v45, -inf  ;;  %v660_v15 = vadd.f32 %v1576_v46, %v652_v12 }
 0x21c   :  { %671 = vmax.xlane.f32.xlu0 %v670_v48  ;;  %v525_v49 = vpop.f32.mrf.mxu1 }
 0x21d   :  { %v659_v50 = vadd.f32 %v651_v47, %v525_v49  ;;  %v679_v22 = vsel %vm663_vm1, %v660_v15, -inf }
 0x21f   :  { %v676_v51 = vsel %vm663_vm1, %v659_v50, -inf }
 0x220   :  { %677 = vmax.xlane.f32.xlu0 %v676_v51 }
 0x222   :  { %v1581_v52 = vpop.f32.mrf.mxu1 }
 0x223   :  { %v662_v21 = vadd.f32 %v1581_v52, %v654_v19 }
 0x224   :  { %v638_v54 = vpop.f32.mrf.mxu1 }
 0x225   :  { %v661_v55 = vadd.f32 %v653_v53, %v638_v54  ;;  %v685_v26 = vsel %vm663_vm1, %v662_v21, -inf }
 0x227   :  { %v682_v56 = vsel %vm663_vm1, %v661_v55, -inf }
 0x228   :  { %683 = vmax.xlane.f32.xlu0 %v682_v56 }
 0x29b   :  { %v669_v57 = vpop.xlane.xlu1 %668 }
 0x29c   :  { %v689_v58 = vsub.f32 %v656_v37, %v669_v57 }
 0x29d   :  { %v666_v59 = vpop.xlane.xlu0 %665 }
 0x29e   :  { %v688_v60 = vsub.f32 %v655_v39, %v666_v59  ;;  %v698_v61 = vmul.f32 1.442695, %v689_v58 }
 0x2a0   :  { %v696_v62 = vmul.f32 1.442695, %v688_v60 }
 0x2a2   :  { %1626 = vpow2.f32 %v696_v62 }
 0x2a3   :  { %1628 = vpow2.f32 %v698_v61 }
 0x2a5   :  { %v672_v63 = vpop.xlane.xlu0 %671 }
 0x2a6   :  { %v690_v0 = vsub.f32 %v657_v45, %v672_v63 }
 0x2a8   :  { %v700_v1 = vmul.f32 1.442695, %v690_v0 }
 0x2a9   :  { %v678_v2 = vpop.xlane.xlu0 %677 }
 0x2aa   :  { %1630 = vpow2.f32 %v700_v1  ;;  %v692_v3 = vsub.f32 %v659_v50, %v678_v2 }
 0x2ac   :  { %v704_v4 = vmul.f32 1.442695, %v692_v3 }
 0x2ae   :  { %1632 = vpow2.f32 %v704_v4 }
 0x2af   :  { %v1627_v5 = vpop.eup %1626 }
 0x2b0   :  { %v712_v7 = vsel %vm663_vm1, %v1627_v5, 0.0  ;;  %v1629_v8 = vpop.eup %1628 }
 0x2b1   :  { %713 = vadd.xlane.f32.xlu1 %v712_v7  ;;  %v684_v9 = vpop.xlane.xlu0 %683  ;;  %v715_v14 = vsel %vm663_vm1, %v1629_v8, 0.0  ;;  %v1177_v7 = vld [vmem:[%s1861_s1 + $0x70] sm:$0xff] }
 0x2b2   :  { %v694_v11 = vsub.f32 %v661_v55, %v684_v9 }
 0x2b4   :  { %v708_v13 = vmul.f32 1.442695, %v694_v11 }
 0x2b5   :  { %716 = vadd.xlane.f32.xlu1 %v715_v14 }
 0x2b6   :  { %1634 = vpow2.f32 %v708_v13  ;;  %v1345_v13 = vld [vmem:[%s1861_s1 + $0x78] sm:$0xff] }
 0x2b7   :  { %v1803_v17 = vpop.eup %1630 }
 0x2b8   :  { %v718_v20 = vsel %vm663_vm1, %v1803_v17, 0.0 }
 0x2b9   :  { %674 = vmax.xlane.f32.xlu1 %v673_v16  ;;  %719 = vadd.xlane.f32.xlu0 %v718_v20  ;;  %v1469_v16 = vld [vmem:[%s1861_s1 + $0xc0] ss:$0 sm:$0xff]  ;;  %s1658_s1 = scalar_lea.vmem %s1437_s6, 256 }
 0x2ba   :  { %p1659_p0 = scmp.ne.s32.totalorder %s1437_s6, %s1658_s1  ;;  %p1664_p2 = scmp.lt.s32.totalorder %s1658_s1, %s1658_s1 }
 0x2bb   :  { %v1633_v23 = vpop.eup %1632 }
 0x2bc   :  { %v724_v25 = vsel %vm663_vm1, %v1633_v23, 0.0  ;;  %p1665_p3 = por %p1664_p2, %p1663_p1 }
 0x2bd   :  { %680 = vmax.xlane.f32.xlu1 %v679_v22  ;;  %725 = vadd.xlane.f32.xlu0 %v724_v25 }
 0x2be   :  { %p1666_p4 = pnand %p1665_p3, %p1659_p0 }
 0x2c1   :  { %686 = vmax.xlane.f32.xlu1 %v685_v26 }
 0x2c3   :  { %v1635_v27 = vpop.eup %1634 }
 0x2c4   :  { %v730_v28 = vsel %vm663_vm1, %v1635_v27, 0.0 }
 0x2c5   :  { %731 = vadd.xlane.f32.xlu0 %v730_v28 }
 0x33a   :  { %v714_v30 = vpop.xlane.xlu1 %713 }
 0x33b   :  { %1636 = vrcp.f32 %v714_v30 }
 0x33e   :  { %v717_v31 = vpop.xlane.xlu1 %716 }
 0x33f   :  { %1638 = vrcp.f32 %v717_v31 }
 0x342   :  { %v675_v32 = vpop.xlane.xlu1 %674  ;;  %v720_v33 = vpop.xlane.xlu0 %719 }
 0x343   :  { %v691_v34 = vsub.f32 %v658_v10, %v675_v32 }
 0x345   :  { %v702_v35 = vmul.f32 1.442695, %v691_v34 }
 0x346   :  { %v681_v36 = vpop.xlane.xlu1 %680  ;;  %v726_v37 = vpop.xlane.xlu0 %725 }
 0x347   :  { %1640 = vpow2.f32 %v702_v35  ;;  %v693_v38 = vsub.f32 %v660_v15, %v681_v36 }
 0x348   :  { %v1637_v39 = vpop.eup %1636  ;;  %1642 = vrcp.f32 %v726_v37 }
 0x349   :  { %v706_v40 = vmul.f32 1.442695, %v693_v38  ;;  %v737_v41 = vmul.f32 %v1637_v39, %v1627_v5 }
 0x34a   :  { %v687_v42 = vpop.xlane.xlu1 %686 }
 0x34b   :  { %1644 = vpow2.f32 %v706_v40  ;;  %v695_v43 = vsub.f32 %v662_v21, %v687_v42  ;;  %1584 = vmatprep.mubr.msk.f32.mxu1 %vm663_vm1, %v737_v41 }
 0x34c   :  { %v1639_v44 = vpop.eup %1638 }
 0x34d   :  { %v710_v45 = vmul.f32 1.442695, %v695_v43  ;;  %v739_v46 = vmul.f32 %v1639_v44, %v1629_v8 }
 0x34e   :  { %v732_v56 = vpop.xlane.xlu0 %731 }
 0x34f   :  { %1646 = vpow2.f32 %v710_v45  ;;  %1585 = vmatmul.mubr.msk.f32.vlgmr.msra.gmra.mxu1 %vm663_vm1, %v739_v46 }
 0x350   :  { %1588 = vmatpush3.msra.mxu1 %v841_v29  ;;  %1648 = vrcp.f32 %v732_v56 }
 0x351   :  { %1592 = vmatprep.subr.msk.mxu1 %vm663_vm1, %v1756_v18 }
 0x354   :  { %v1641_v47 = vpop.eup %1640 }
 0x355   :  { %v1643_v48 = vpop.eup %1642  ;;  %v721_v49 = vsel %vm663_vm1, %v1641_v47, 0.0 }
 0x356   :  { %722 = vadd.xlane.f32.xlu1 %v721_v49  ;;  %v745_v50 = vmul.f32 %v1643_v48, %v1633_v23 }
 0x358   :  { %v1645_v51 = vpop.eup %1644  ;;  %1604 = vmatprep.mubr.msk.f32.mxu0 %vm663_vm1, %v745_v50 }
 0x359   :  { %v727_v52 = vsel %vm663_vm1, %v1645_v51, 0.0 }
 0x35a   :  { %728 = vadd.xlane.f32.xlu1 %v727_v52 }
 0x35c   :  { %v1647_v53 = vpop.eup %1646 }
 0x35d   :  { %v733_v54 = vsel %vm663_vm1, %v1647_v53, 0.0  ;;  %v1649_v59 = vpop.eup %1648 }
 0x35e   :  { %734 = vadd.xlane.f32.xlu1 %v733_v54  ;;  %v749_v62 = vmul.f32 %v1649_v59, %v1635_v27 }
 0x3df   :  { %v723_v55 = vpop.xlane.xlu1 %722 }
 0x3e3   :  { %v729_v57 = vpop.xlane.xlu1 %728 }
 0x3e4   :  { %1650 = vrcp.f32 %v729_v57 }
 0x3e7   :  { %v735_v58 = vpop.xlane.xlu1 %734 }
 0x3e8   :  { %1652 = vrcp.f32 %v735_v58 }
 0x3e9   :  { %1654 = vrcp.f32 %v720_v33 }
 0x3ea   :  { %1656 = vrcp.f32 %v723_v55 }
 0x3f1   :  { %v1651_v60 = vpop.eup %1650 }
 0x3f2   :  { %v747_v61 = vmul.f32 %v1651_v60, %v1645_v51 }
 0x3f4   :  { %1605 = vmatmul.mubr.msk.f32.vlgmr.msra.gmra.mxu0 %vm663_vm1, %v747_v61 }
 0x3f5   :  { %v1653_v63 = vpop.eup %1652  ;;  %1613 = vmatpush3.xpose.msk.msra.mxu0 %vm663_vm1, %v1759_v24  ;;  %1614 = vmatprep.mubr.msk.f32.mxu0 %vm663_vm1, %v749_v62 }
 0x3f6   :  { %v751_v0 = vmul.f32 %v1653_v63, %v1647_v53  ;;  %v1655_v1 = vpop.eup %1654 }
 0x3f7   :  { %v1657_v4 = vpop.eup %1656  ;;  %v741_v5 = vmul.f32 %v1655_v1, %v1803_v17 }
 0x3f8   :  { %1615 = vmatmul.mubr.msk.f32.vlgmr.msra.gmra.mxu0 %vm663_vm1, %v751_v0  ;;  %v743_v24 = vmul.f32 %v1657_v4, %v1641_v47 }
 0x40f   :  { %v1586_v2 = vpop.f32.mrf.mxu1 }
 0x411   :  { %v832_v3 = vpop.f32.mrf.mxu1 }
 0x412   :  { %1589 = vmatprep.mubr.msk.f32.mxu1 %vm226_vm2, %v832_v3 }
 0x413   :  { %1590 = vmatmul.mubr.msk.f32.vlgmr.msra.gmra.mxu1 %vm226_vm2, %v1586_v2 }
 0x414   :  { %1593 = vmatpush3.xpose.msk.msra.mxu1 %vm663_vm1, %v1756_v18  ;;  %1594 = vmatprep.mubr.msk.f32.mxu1 %vm663_vm1, %v741_v5 }
 0x415   :  { %1597 = vmatprep.subr.mxu1 %v1009_v6 }
 0x417   :  { %1595 = vmatmul.mubr.msk.f32.vlgmr.msra.gmra.mxu1 %vm663_vm1, %v743_v24 }
 0x418   :  { %1598 = vmatpush3.msra.mxu1 %v1009_v6 }
 0x419   :  { %1607 = vmatprep.subr.mxu1 %v1177_v7 }
 0x4b4   :  { %v1606_v8 = vpop.f32.mrf.mxu0 }
 0x4b6   :  { %v1168_v18 = vpop.f32.mrf.mxu0 }
 0x4b8   :  { %v1616_v14 = vpop.f32.mrf.mxu0 }
 0x4ba   :  { %v1336_v15 = vpop.f32.mrf.mxu0 }
 0x4d3   :  { %v1591_v9 = vpop.f32.mrf.mxu1 }
 0x4d4   :  { %v924_v20 = vadd.f32 %v1591_v9, %v1469_v16 }
 0x4d5   :  { %v914_v10 = vpop.f32.mrf.mxu1 }
 0x4d6   :  { %v923_v22 = vadd.f32 %v1469_v16, %v914_v10 }
 0x4d7   :  { %v1596_v11 = vpop.f32.mrf.mxu1 }
 0x4d9   :  { %v1000_v12 = vpop.f32.mrf.mxu1 }
 0x4da   :  { %1599 = vmatprep.mubr.msk.f32.mxu1 %vm226_vm2, %v1000_v12 }
 0x4db   :  { %1600 = vmatmul.mubr.msk.f32.vlgmr.msra.gmra.mxu1 %vm226_vm2, %v1596_v11 }
 0x4dc   :  { %1608 = vmatpush3.msra.mxu1 %v1177_v7  ;;  %1609 = vmatprep.mubr.msk.f32.mxu1 %vm226_vm2, %v1168_v18 }
 0x4dd   :  { %1617 = vmatprep.subr.mxu1 %v1345_v13 }
 0x4df   :  { %1610 = vmatmul.mubr.msk.f32.vlgmr.msra.gmra.mxu1 %vm226_vm2, %v1606_v8 }
 0x4e0   :  { %1618 = vmatpush3.msra.mxu1 %v1345_v13  ;;  %1619 = vmatprep.mubr.msk.f32.mxu1 %vm226_vm2, %v1336_v15 }
 0x4e3   :  { %1620 = vmatmul.mubr.msk.f32.vlgmr.msra.gmra.mxu1 %vm226_vm2, %v1616_v14 }
 0x59b   :  { %v1601_v17 = vpop.f32.mrf.mxu1 }
 0x59c   :  { %v1092_v23 = vadd.f32 %v1601_v17, %v924_v20 }
 0x59d   :  { %v1082_v19 = vpop.f32.mrf.mxu1 }
 0x59e   :  { %v1091_v26 = vadd.f32 %v1082_v19, %v923_v22 }
 0x59f   :  { %v1611_v21 = vpop.f32.mrf.mxu1 }
 0x5a0   :  { %v1260_v27 = vadd.f32 %v1611_v21, %v1092_v23 }
 0x5a1   :  { %v1250_v25 = vpop.f32.mrf.mxu1 }
 0x5a2   :  { %v1259_v29 = vadd.f32 %v1250_v25, %v1091_v26 }
 0x5a3   :  { %v1621_v28 = vpop.f32.mrf.mxu1 }
 0x5a4   :  { %v1428_v30 = vadd.f32 %v1621_v28, %v1260_v27 }
 0x5a5   :  { %v1418_v31 = vpop.f32.mrf.mxu1 }
 0x5a6   :  { %1430 = vst.msk [vmem:[#allocation2 + $0x8] sm:$0xff] %vm26_vm0, %v1428_v30  ;;  %v1427_v32 = vadd.f32 %v1418_v31, %v1259_v29 }
 0x5a8   :  { %1429 = vst.msk [vmem:[#allocation2] sm:$0xff] %vm26_vm0, %v1427_v32 }
 0x5a9   :  { %1669 = shalt.err (!%p1666_p4)
}
 0x5aa   :  { %s1681_s7 = smov 128   ;;  %s1682_s8 = smov 8  }
 0x5ab   :  { %1442 = dma.vmem_to_hbm [thread:$0]  %s1437_s6, 256, %s1862_s2, [#allocation3], %s1681_s7, %s1681_s7, %s1682_s8  }
 0x5ac   :  { %1678 = dma.done.wait [#allocation3], 256  }
 0x5ad   :  { %1679 = vsyncadd [#allocation3], 4294967040 }
 0x5ae   :  { %1446 = vsyncpa [#allocation3], 1 }

</bundles_post_ra>
